<compile_context>
chip_gen: v6e
topology: v6e:2x2x1
jax: 0.10.0
libtpu: 0.0.40
codegen_flags: <defaults>
</compile_context>

<pallas_src>
import functools

import jax
import jax.numpy as jnp
from jax import lax
from jax.experimental import pallas as pl
from jax.experimental.pallas import tpu as pltpu


def _composite_matcher_kernel(x_ref, out_ref, *, min_threshold, num_gt):
    # x_ref block:  (M, TILE) in the input's native dtype (anchors on lanes).
    # out_ref block: (1, TILE) float32 (lane-dense store).
    best_val = x_ref[0:1, :].astype(jnp.float32)             # (1, TILE)
    best_idx = jnp.zeros_like(best_val)                      # row 0 is the initial argmax

    if num_gt <= 64:
        # Typical detection case (few GT boxes): fully unrolled running max/argmax.
        for j in range(1, num_gt):
            v = x_ref[j:j + 1, :].astype(jnp.float32)
            take = v > best_val                              # strict '>' keeps first-index ties
            best_val = jnp.where(take, v, best_val)
            best_idx = jnp.where(take, jnp.float32(j), best_idx)
    else:
        def body(j, carry):
            bv, bi = carry
            v = x_ref[pl.ds(j, 1), :].astype(jnp.float32)
            take = v > bv
            return (jnp.where(take, v, bv),
                    jnp.where(take, j.astype(jnp.float32), bi))
        best_val, best_idx = lax.fori_loop(1, num_gt, body, (best_val, best_idx))

    # CompositeMatcher over MaximumMatchers == one compare against the smallest threshold.
    out_ref[...] = jnp.where(best_val >= jnp.float32(min_threshold),
                             best_idx, jnp.float32(-1.0))


def _pick_lane_tile(total_lanes, num_gt, itemsize, budget_bytes=12 * 1024 * 1024):
    """Largest lane tile that is a multiple of 128 dividing the lane extent and keeps the
    double-buffered working set within `budget_bytes` (fits v5e/v6e/v7x VMEM)."""
    if total_lanes % 128 != 0:
        return int(total_lanes)                  # must take the full extent
    m_pad = -(-num_gt // 8) * 8                  # sublane padding of the input block
    bytes_per_lane = 2 * m_pad * itemsize + 2 * 8 * 4   # dbl-buffered input + f32 out row
    tile = max(128, (budget_bytes // bytes_per_lane) // 128 * 128)
    tile = min(tile, total_lanes)
    while total_lanes % tile:                    # terminates: 128 divides total_lanes
        tile -= 128
    return int(tile)


def composite_matcher(x, thresholds=(0.5, 0.2)):
    """x: (B, N, M) IoU-like scores. Returns (B, N) float32 match indices (-1 = unmatched)."""
    assert len(thresholds) > 0, "At least one matcher required."
    b, n, m = x.shape
    min_thr = float(min(thresholds))

    # Put anchors on the lane axis: (B, N, M) -> (M, B*N).  Flattening B into the lane
    # axis also gives the single parallel grid axis plenty of tiles even for small B.
    # TODO(synk): in a real pipeline the producer should emit this (M, B*N) layout
    # directly so this one-time relayout disappears.
    lanes = b * n
    xt = jnp.transpose(x, (2, 0, 1)).reshape(m, lanes)

    itemsize = jnp.dtype(x.dtype).itemsize
    tile = _pick_lane_tile(lanes, m, itemsize)
    grid = (lanes // tile,)

    kernel = functools.partial(_composite_matcher_kernel,
                               min_threshold=min_thr, num_gt=m)

    out = pl.pallas_call(
        kernel,
        out_shape=jax.ShapeDtypeStruct((1, lanes), jnp.float32),
        grid_spec=pltpu.PrefetchScalarGridSpec(
            num_scalar_prefetch=0,
            grid=grid,
            in_specs=[pl.BlockSpec((m, tile), lambda i: (0, i))],
            out_specs=pl.BlockSpec((1, tile), lambda i: (0, i)),
        ),
        compiler_params=pltpu.CompilerParams(
            dimension_semantics=("parallel",),
            vmem_limit_bytes=32 * 1024 * 1024,
        ),
        cost_estimate=pl.CostEstimate(
            flops=3 * b * n * m,
            transcendentals=0,
            bytes_accessed=b * n * m * itemsize + b * n * 4,
        ),
    )(xt)
    return out.reshape(b, n)


def _reference(x, thresholds=(0.5, 0.2)):
    """Pure-JAX reference matching the PyTorch semantics (explicit compose chain)."""
    row_max = jnp.max(x, axis=-1)
    arg = jnp.argmax(x, axis=-1).astype(jnp.float32)
    matches = [jnp.where(row_max >= t, arg, -1.0) for t in thresholds]
    result = matches[0]
    for match in matches[1:]:
        result = jnp.where(result > -0.5, result, match)
    return result


if __name__ == "__main__":
    key = jax.random.PRNGKey(0)

    # Small shapes consistent with the module: batch=2, N=16 anchors, M=8 GT boxes.
    B, N, M = 2, 16, 8
    x = jax.random.uniform(key, (B, N, M), dtype=jnp.float32)
    out = composite_matcher(x, thresholds=(0.5, 0.2))
    jax.block_until_ready(out)
    ref = _reference(x, thresholds=(0.5, 0.2))
    assert out.shape == (B, N), out.shape
    assert jnp.allclose(out, ref), (out, ref)

    # Second case: bf16 input (native-dtype load, in-kernel upcast) with a 128-aligned
    # anchor count to exercise the lane-tiling path.
    x2 = jax.random.uniform(jax.random.PRNGKey(1), (2, 256, 8),
                            dtype=jnp.float32).astype(jnp.bfloat16)
    out2 = composite_matcher(x2, thresholds=(0.5, 0.2))
    jax.block_until_ready(out2)
    ref2 = _reference(x2.astype(jnp.float32), thresholds=(0.5, 0.2))
    assert out2.shape == (2, 256), out2.shape
    assert jnp.allclose(out2, ref2), (out2, ref2)

    print("KERNEL_OK")
</pallas_src>

<mosaic_0001>
module attributes {stable_mosaic.version = 11 : i64} {
  func.func @_composite_matcher_kernel(%arg0: i32, %arg1: memref<8x32xf32, #tpu.memory_space<vmem>>, %arg2: memref<1x32xf32, #tpu.memory_space<vmem>>) attributes {dimension_semantics = [#tpu.dimension_semantics<parallel>], iteration_bounds = array<i64: 1>, scalar_prefetch = 0 : i64, scratch_operands = 0 : i64, tpu.core_type = #tpu.core_type<tc>, window_params = [{transform_indices = @transform_0, window_bounds = array<i64: 8, 32>}, {transform_indices = @transform_1, window_bounds = array<i64: 1, 32>}]} {
    %c0 = arith.constant 0 : index
    %c0_0 = arith.constant 0 : index
    %0 = vector.load %arg1[%c0, %c0_0] : memref<8x32xf32, #tpu.memory_space<vmem>>, vector<1x32xf32>
    %cst = arith.constant 0.000000e+00 : f32
    %1 = vector.broadcast %cst : f32 to vector<1x32xf32>
    %c1 = arith.constant 1 : index
    %c0_1 = arith.constant 0 : index
    %2 = vector.load %arg1[%c1, %c0_1] : memref<8x32xf32, #tpu.memory_space<vmem>>, vector<1x32xf32>
    %3 = arith.cmpf ogt, %2, %0 : vector<1x32xf32>
    %4 = arith.select %3, %2, %0 : vector<1x32xi1>, vector<1x32xf32>
    %cst_2 = arith.constant 1.000000e+00 : f32
    %5 = vector.broadcast %cst_2 : f32 to vector<1x32xf32>
    %6 = arith.select %3, %5, %1 : vector<1x32xi1>, vector<1x32xf32>
    %c2 = arith.constant 2 : index
    %c0_3 = arith.constant 0 : index
    %7 = vector.load %arg1[%c2, %c0_3] : memref<8x32xf32, #tpu.memory_space<vmem>>, vector<1x32xf32>
    %8 = arith.cmpf ogt, %7, %4 : vector<1x32xf32>
    %9 = arith.select %8, %7, %4 : vector<1x32xi1>, vector<1x32xf32>
    %cst_4 = arith.constant 2.000000e+00 : f32
    %10 = vector.broadcast %cst_4 : f32 to vector<1x32xf32>
    %11 = arith.select %8, %10, %6 : vector<1x32xi1>, vector<1x32xf32>
    %c3 = arith.constant 3 : index
    %c0_5 = arith.constant 0 : index
    %12 = vector.load %arg1[%c3, %c0_5] : memref<8x32xf32, #tpu.memory_space<vmem>>, vector<1x32xf32>
    %13 = arith.cmpf ogt, %12, %9 : vector<1x32xf32>
    %14 = arith.select %13, %12, %9 : vector<1x32xi1>, vector<1x32xf32>
    %cst_6 = arith.constant 3.000000e+00 : f32
    %15 = vector.broadcast %cst_6 : f32 to vector<1x32xf32>
    %16 = arith.select %13, %15, %11 : vector<1x32xi1>, vector<1x32xf32>
    %c4 = arith.constant 4 : index
    %c0_7 = arith.constant 0 : index
    %17 = vector.load %arg1[%c4, %c0_7] : memref<8x32xf32, #tpu.memory_space<vmem>>, vector<1x32xf32>
    %18 = arith.cmpf ogt, %17, %14 : vector<1x32xf32>
    %19 = arith.select %18, %17, %14 : vector<1x32xi1>, vector<1x32xf32>
    %cst_8 = arith.constant 4.000000e+00 : f32
    %20 = vector.broadcast %cst_8 : f32 to vector<1x32xf32>
    %21 = arith.select %18, %20, %16 : vector<1x32xi1>, vector<1x32xf32>
    %c5 = arith.constant 5 : index
    %c0_9 = arith.constant 0 : index
    %22 = vector.load %arg1[%c5, %c0_9] : memref<8x32xf32, #tpu.memory_space<vmem>>, vector<1x32xf32>
    %23 = arith.cmpf ogt, %22, %19 : vector<1x32xf32>
    %24 = arith.select %23, %22, %19 : vector<1x32xi1>, vector<1x32xf32>
    %cst_10 = arith.constant 5.000000e+00 : f32
    %25 = vector.broadcast %cst_10 : f32 to vector<1x32xf32>
    %26 = arith.select %23, %25, %21 : vector<1x32xi1>, vector<1x32xf32>
    %c6 = arith.constant 6 : index
    %c0_11 = arith.constant 0 : index
    %27 = vector.load %arg1[%c6, %c0_11] : memref<8x32xf32, #tpu.memory_space<vmem>>, vector<1x32xf32>
    %28 = arith.cmpf ogt, %27, %24 : vector<1x32xf32>
    %29 = arith.select %28, %27, %24 : vector<1x32xi1>, vector<1x32xf32>
    %cst_12 = arith.constant 6.000000e+00 : f32
    %30 = vector.broadcast %cst_12 : f32 to vector<1x32xf32>
    %31 = arith.select %28, %30, %26 : vector<1x32xi1>, vector<1x32xf32>
    %c7 = arith.constant 7 : index
    %c0_13 = arith.constant 0 : index
    %32 = vector.load %arg1[%c7, %c0_13] : memref<8x32xf32, #tpu.memory_space<vmem>>, vector<1x32xf32>
    %33 = arith.cmpf ogt, %32, %29 : vector<1x32xf32>
    %34 = arith.select %33, %32, %29 : vector<1x32xi1>, vector<1x32xf32>
    %cst_14 = arith.constant 7.000000e+00 : f32
    %35 = vector.broadcast %cst_14 : f32 to vector<1x32xf32>
    %36 = arith.select %33, %35, %31 : vector<1x32xi1>, vector<1x32xf32>
    %cst_15 = arith.constant 2.000000e-01 : f32
    %37 = vector.broadcast %cst_15 : f32 to vector<1x32xf32>
    %38 = arith.cmpf oge, %34, %37 : vector<1x32xf32>
    %cst_16 = arith.constant -1.000000e+00 : f32
    %39 = vector.broadcast %cst_16 : f32 to vector<1x32xf32>
    %40 = arith.select %38, %36, %39 : vector<1x32xi1>, vector<1x32xf32>
    %c0_17 = arith.constant 0 : index
    %c0_18 = arith.constant 0 : index
    %41 = vector.load %arg2[%c0_17, %c0_18] : memref<1x32xf32, #tpu.memory_space<vmem>>, vector<1x32xf32>
    tpu.vector_store %arg2[%c0_17, %c0_18], %40 {strides = array<i32>} : memref<1x32xf32, #tpu.memory_space<vmem>>, vector<1x32xf32>,
    return
  }
  func.func @transform_0(%arg0: i32) -> (i32, i32) {
    %c0_i32 = arith.constant 0 : i32
    %c0_i32_0 = arith.constant 0 : i32
    return %c0_i32, %arg0 : i32, i32
  }
  func.func @transform_1(%arg0: i32) -> (i32, i32) {
    %c0_i32 = arith.constant 0 : i32
    %c0_i32_0 = arith.constant 0 : i32
    return %c0_i32, %arg0 : i32, i32
  }
}

</mosaic_0001>

<bundles_post_ra>
// kernel: tpu_custom_call.1
= control target key start
LH: loop header
LB: loop body
LE: loop exit
PB: predicated region body
PF: predicated region fallthrough
CT: control target
= control target key end

     0   :  { %6 = vsyncpa [#allocation3], 0  ;;  %s135_s0 = inlined_call_operand.hbm [shape: f32[8,32], index: 0, kind: input, shape index: {}]   ;;  %s136_s1 = inlined_call_operand.hbm [shape: f32[1,32], index: 1, kind: output, shape index: {}]  }
   0x1   :  { %7 = vsyncpa [#allocation4], 0  ;;  %s116_s6 = smov [#allocation2]  }
   0x2   :  { %s14_s7 = sshll.u32 %s116_s6, 4  ;;  %s15_s7 = int_to_ptr.vmem [resolvable:$true] %s14_s7 }
   0x3   :  { %s80_s8 = scalar_lea.vmem %s15_s7, 128  ;;  %p85_p1 = scmp.lt.s32.totalorder %s15_s7, %s15_s7 }
   0x4   :  { %p81_p0 = scmp.ne.s32.totalorder %s15_s7, %s80_s8  ;;  %p86_p2 = scmp.lt.s32.totalorder %s80_s8, %s80_s8 }
   0x6   :  { %p87_p3 = por %p86_p2, %p85_p1 }
   0x8   :  { %p88_p4 = pnand %p87_p3, %p81_p0 }
   0xa   :  { %91 = shalt.err (!%p88_p4)
}
   0xb   :  { %17 = dma.hbm_to_vmem [thread:$0]  %s135_s0, 128, %s15_s7, [#allocation3]  }
   0xc   :  { %112 = dma.done.wait [#allocation3], 128  }
   0xd   :  { %113 = vsyncadd [#allocation3], 4294967168  ;;  %v21_v0 = vld [vmem:[#allocation2] sm:$0x1]  ;;  %v22_v1 = vld [vmem:[#allocation2 + $0x1] sm:$0x1] }
   0xe   :  { %v26_v2 = vld [vmem:[#allocation2 + $0x2] sm:$0x1]  ;;  %vm23_vm0 = vcmp.gt.f32.partialorder %v22_v1, %v21_v0  ;;  %v117_v4 = vmov 0.0   ;;  %v30_v6 = vld [vmem:[#allocation2 + $0x3] sm:$0x1]  ;;  %s118_s0 = smov [#allocation5]  }
   0xf   :  { %v24_v3 = vsel %vm23_vm0, %v22_v1, %v21_v0  ;;  %v25_v5 = vsel %vm23_vm0, 1.0, %v117_v4  ;;  %v34_v9 = vld [vmem:[#allocation2 + $0x4] sm:$0x1]  ;;  %v38_v12 = vld [vmem:[#allocation2 + $0x5] sm:$0x1]  ;;  %s60_s11 = sshll.u32 %s118_s0, 4  ;;  %s61_s11 = int_to_ptr.vmem [resolvable:$true] %s60_s11 }
  0x10   :  { %vm27_vm1 = vcmp.gt.f32.partialorder %v26_v2, %v24_v3  ;;  %v42_v15 = vld [vmem:[#allocation2 + $0x6] sm:$0x1]  ;;  %v46_v18 = vld [vmem:[#allocation2 + $0x7] sm:$0x1]  ;;  %vm52_vm7 = vcmask 253952   ;;  %s92_s12 = scalar_lea.vmem %s61_s11, 16  ;;  %p97_p6 = scmp.lt.s32.totalorder %s61_s11, %s61_s11 }
  0x11   :  { %v28_v7 = vsel %vm27_vm1, %v26_v2, %v24_v3  ;;  %v29_v8 = vsel %vm27_vm1, 2.0, %v25_v5  ;;  %p93_p5 = scmp.ne.s32.totalorder %s61_s11, %s92_s12  ;;  %s96_s13 = scalar_lea.vmem %s61_s11, 32 }
  0x12   :  { %vm31_vm2 = vcmp.gt.f32.partialorder %v30_v6, %v28_v7  ;;  %p98_p7 = scmp.lt.s32.totalorder %s96_s13, %s92_s12 }
  0x13   :  { %v32_v10 = vsel %vm31_vm2, %v30_v6, %v28_v7  ;;  %v33_v11 = vsel %vm31_vm2, 3.0, %v29_v8 }
  0x14   :  { %vm35_vm3 = vcmp.gt.f32.partialorder %v34_v9, %v32_v10  ;;  %p99_p8 = por %p98_p7, %p97_p6 }
  0x15   :  { %v36_v13 = vsel %vm35_vm3, %v34_v9, %v32_v10  ;;  %v37_v14 = vsel %vm35_vm3, 4.0, %v33_v11 }
  0x16   :  { %vm39_vm4 = vcmp.gt.f32.partialorder %v38_v12, %v36_v13  ;;  %p100_p9 = pnand %p99_p8, %p93_p5 }
  0x17   :  { %v40_v16 = vsel %vm39_vm4, %v38_v12, %v36_v13  ;;  %v41_v17 = vsel %vm39_vm4, 5.0, %v37_v14 }
  0x18   :  { %vm43_vm5 = vcmp.gt.f32.partialorder %v42_v15, %v40_v16 }
  0x19   :  { %v44_v19 = vsel %vm43_vm5, %v42_v15, %v40_v16  ;;  %v45_v20 = vsel %vm43_vm5, 6.0, %v41_v17 }
  0x1a   :  { %vm47_vm6 = vcmp.gt.f32.partialorder %v46_v18, %v44_v19 }
  0x1b   :  { %v48_v21 = vsel %vm47_vm6, %v46_v18, %v44_v19  ;;  %v49_v22 = vsel %vm47_vm6, 7.0, %v45_v20 }
  0x1c   :  { %vm50_vm8 = vcmp.ge.f32.partialorder %v48_v21, 0.2 }
  0x1d   :  { %v51_v23 = vsel %vm50_vm8, %v49_v22, -1.0 }
  0x1e   :  { %53 = vst.msk [vmem:[#allocation5] sm:$0x1] %vm52_vm7, %v51_v23 }
  0x1f   :  { %103 = shalt.err (!%p100_p9)
}
  0x20   :  { %63 = dma.vmem_to_hbm [thread:$0]  %s61_s11, 16, %s136_s1, [#allocation4]  }
  0x21   :  { %114 = dma.done.wait [#allocation4], 16  }
  0x22   :  { %115 = vsyncadd [#allocation4], 4294967280 }
  0x23   :  { %67 = vsyncpa [#allocation3], 1 }
  0x24   :  { %68 = vsyncpa [#allocation4], 1 }

</bundles_post_ra>
